<compile_context>
chip_gen: v6e
topology: v6e:2x2x1
jax: 0.10.0
libtpu: 0.0.40
codegen_flags: <defaults>
</compile_context>

<pallas_src>
import functools
import math

import jax
import jax.numpy as jnp
from jax.experimental import pallas as pl
from jax.experimental.pallas import tpu as pltpu


def _choose_tile(dim, target, align):
    """Largest tile <= target that is a multiple of `align` and divides `dim`,
    falling back to the full dim (always a legal block shape)."""
    if dim <= target:
        return dim
    t = (target // align) * align
    while t >= align:
        if dim % t == 0:
            return t
        t -= align
    return dim


# ---------------------------------------------------------------------------
# Kernel 1: tiled Conv1D projection  (x @ W + b), bf16 MXU inputs, f32 accum.
# ---------------------------------------------------------------------------
def _proj_kernel(x_ref, w_ref, b_ref, o_ref, acc_ref):
    k = pl.program_id(2)

    @pl.when(k == 0)
    def _init():
        acc_ref[...] = jnp.zeros_like(acc_ref)

    acc_ref[...] += jnp.dot(x_ref[...], w_ref[...],
                            preferred_element_type=jnp.float32)

    @pl.when(k == pl.num_programs(2) - 1)
    def _finalize():
        o_ref[...] = (acc_ref[...] + b_ref[...].astype(jnp.float32)
                      ).astype(o_ref.dtype)


def conv1d_proj(x2d, w, b, *, out_dtype=None, mxu_dtype=jnp.bfloat16,
                tm=256, tn=256, tk=768):
    """x2d: (M, K), w: (K, N), b: (N,) -> (M, N) in out_dtype."""
    M, K = x2d.shape
    Kw, N = w.shape
    assert K == Kw
    out_dtype = out_dtype if out_dtype is not None else x2d.dtype

    # Tiles sized conservatively so 2x double-buffered bf16 inputs + f32
    # accumulator stay far below v7x's 32 MiB scoped VMEM.
    tm = _choose_tile(M, tm, 8)
    tn = _choose_tile(N, tn, 128)
    tk = _choose_tile(K, tk, 128)
    grid = (M // tm, N // tn, K // tk)

    x_c = x2d.astype(mxu_dtype)
    w_c = w.astype(mxu_dtype)
    b2 = b.reshape(1, N).astype(jnp.float32)

    return pl.pallas_call(
        _proj_kernel,
        out_shape=jax.ShapeDtypeStruct((M, N), out_dtype),
        grid_spec=pltpu.PrefetchScalarGridSpec(
            num_scalar_prefetch=0,
            grid=grid,
            in_specs=[
                pl.BlockSpec((tm, tk), lambda i, j, k: (i, k)),
                pl.BlockSpec((tk, tn), lambda i, j, k: (k, j)),
                pl.BlockSpec((1, tn), lambda i, j, k: (0, j)),
            ],
            out_specs=pl.BlockSpec((tm, tn), lambda i, j, k: (i, j)),
            scratch_shapes=[pltpu.VMEM((tm, tn), jnp.float32)],
        ),
        compiler_params=pltpu.CompilerParams(
            dimension_semantics=("parallel", "parallel", "arbitrary")),
    )(x_c, w_c, b2)


# ---------------------------------------------------------------------------
# Kernel 2: causal flash attention (online softmax over KV blocks).
# qkv is (B, S, 3, H, D) (a free reshape of the (B*S, 3E) c_attn output);
# q/k/v and heads are selected via BlockSpec index maps, output is written
# directly in merged-head (B, S, E) layout (lane-dense stores).
# ---------------------------------------------------------------------------
def _flash_attn_kernel(q_ref, k_ref, v_ref, o_ref, m_sc, l_sc, acc_sc, *,
                       scale, num_heads, head_dim, block_q, block_k, mxu_dtype):
    qi = pl.program_id(1)
    ki = pl.program_id(2)
    nk = pl.num_programs(2)

    @pl.when(ki == 0)
    def _init():
        m_sc[...] = jnp.full_like(m_sc, -jnp.inf)
        l_sc[...] = jnp.zeros_like(l_sc)
        acc_sc[...] = jnp.zeros_like(acc_sc)

    q_start = qi * block_q
    k_start = ki * block_k

    # Causal block skip: the KV block is entirely above the diagonal iff
    # k_start > q_start + block_q - 1.
    @pl.when(k_start <= q_start + block_q - 1)
    def _compute():
        # Per-tile causal mask, shared by every head (not a full (S,S) iota).
        row = q_start + jax.lax.broadcasted_iota(jnp.int32,
                                                 (block_q, block_k), 0)
        col = k_start + jax.lax.broadcasted_iota(jnp.int32,
                                                 (block_q, block_k), 1)
        causal = row >= col

        for h in range(num_heads):                       # static unroll, small H
            # Fold 1/sqrt(D) into q (S*D multiplies instead of S*S).
            q = (q_ref[0, :, 0, h, :].astype(jnp.float32) * scale
                 ).astype(mxu_dtype)                      # (bq, D)
            k = k_ref[0, :, 0, h, :].astype(mxu_dtype)    # (bk, D)
            v = v_ref[0, :, 0, h, :].astype(mxu_dtype)    # (bk, D)

            # q @ k^T without materializing k.T (contract last dims).
            s = jax.lax.dot_general(
                q, k, dimension_numbers=(((1,), (1,)), ((), ())),
                preferred_element_type=jnp.float32)       # (bq, bk) f32
            s = jnp.where(causal, s, jnp.float32(-1e30))  # f32-safe mask value

            m_prev = m_sc[h]                              # (bq, 1)
            m_new = jnp.maximum(m_prev, jnp.max(s, axis=-1, keepdims=True))
            alpha = jnp.exp(m_prev - m_new)
            p = jnp.exp(s - m_new)                        # unnormalized probs
            l_sc[h] = alpha * l_sc[h] + jnp.sum(p, axis=-1, keepdims=True)
            acc_sc[h] = alpha * acc_sc[h] + jnp.dot(
                p.astype(mxu_dtype), v,
                preferred_element_type=jnp.float32)       # (bq, D)
            m_sc[h] = m_new

    @pl.when(ki == nk - 1)
    def _finalize():
        # Deferred normalization: (bq, D) multiplies, reciprocal on the EUP.
        for h in range(num_heads):
            out = acc_sc[h] * pl.reciprocal(l_sc[h], approx=True)
            o_ref[0, :, h * head_dim:(h + 1) * head_dim] = out.astype(o_ref.dtype)


def causal_flash_attention(qkv, num_heads, *, out_dtype,
                           mxu_dtype=jnp.bfloat16, block_q=128, block_k=128):
    """qkv: (B, S, 3, H, D) -> attention output in merged-head layout (B, S, H*D)."""
    B, S, three, H, D = qkv.shape
    assert three == 3 and H == num_heads

    bq = _choose_tile(S, block_q, 8)
    bk = _choose_tile(S, block_k, 8)
    grid = (B, S // bq, S // bk)
    scale = 1.0 / math.sqrt(D)

    kernel = functools.partial(
        _flash_attn_kernel, scale=scale, num_heads=H, head_dim=D,
        block_q=bq, block_k=bk, mxu_dtype=mxu_dtype)

    # Same qkv buffer fed three times; the "3" axis index map picks q / k / v,
    # so there is no jnp.split and no head transpose at the HBM level.
    q_spec = pl.BlockSpec((1, bq, 1, H, D), lambda b, qi, ki: (b, qi, 0, 0, 0))
    k_spec = pl.BlockSpec((1, bk, 1, H, D), lambda b, qi, ki: (b, ki, 1, 0, 0))
    v_spec = pl.BlockSpec((1, bk, 1, H, D), lambda b, qi, ki: (b, ki, 2, 0, 0))
    o_spec = pl.BlockSpec((1, bq, H * D), lambda b, qi, ki: (b, qi, 0))

    return pl.pallas_call(
        kernel,
        out_shape=jax.ShapeDtypeStruct((B, S, H * D), out_dtype),
        grid_spec=pltpu.PrefetchScalarGridSpec(
            num_scalar_prefetch=0,
            grid=grid,
            in_specs=[q_spec, k_spec, v_spec],
            out_specs=o_spec,
            scratch_shapes=[
                pltpu.VMEM((H, bq, 1), jnp.float32),   # running max m
                pltpu.VMEM((H, bq, 1), jnp.float32),   # running sum l
                pltpu.VMEM((H, bq, D), jnp.float32),   # output accumulator
            ],
        ),
        compiler_params=pltpu.CompilerParams(
            dimension_semantics=("parallel", "parallel", "arbitrary")),
    )(qkv, qkv, qkv)


# ---------------------------------------------------------------------------
# Module wrapper (only free reshapes in plain JAX — no transposes, no splits).
# ---------------------------------------------------------------------------
def gpt2_flash_attention2_forward(hidden_states, params, num_heads,
                                  *, mxu_dtype=jnp.bfloat16):
    """hidden_states: (B, S, E) float32.  Returns (B, S, E) float32."""
    B, S, E = hidden_states.shape
    head_dim = E // num_heads

    x2d = hidden_states.reshape(B * S, E)

    # c_attn: (B*S, E) @ (E, 3E) + (3E,).  Output kept in bf16: it feeds the
    # attention MXU anyway and halves the intermediate HBM round trip.
    qkv = conv1d_proj(x2d, params["w_attn"], params["b_attn"],
                      out_dtype=mxu_dtype, mxu_dtype=mxu_dtype)      # (B*S, 3E)

    # Free reshape: the 3E columns are laid out as (3, H, D) — no transpose/split.
    qkv5 = qkv.reshape(B, S, 3, num_heads, head_dim)

    # Flash attention (causal, scale=1/sqrt(D), dropout=0 in eval); output is
    # already in merged-head (B, S, E) layout.
    attn = causal_flash_attention(qkv5, num_heads,
                                  out_dtype=mxu_dtype, mxu_dtype=mxu_dtype)

    # c_proj: (B*S, E) @ (E, E) + (E,).  resid_dropout is identity in eval.
    # TODO(synk): optionally fuse c_proj into the attention epilogue to remove
    # one more HBM round trip of the (B,S,E) activation.
    out = conv1d_proj(attn.reshape(B * S, E), params["w_proj"], params["b_proj"],
                      out_dtype=hidden_states.dtype, mxu_dtype=mxu_dtype)
    return out.reshape(B, S, E)


# ---------------------------------------------------------------------------
# Pure-JAX f32 reference for a sanity check.
# ---------------------------------------------------------------------------
def reference_forward(hidden_states, params, num_heads):
    B, S, E = hidden_states.shape
    D = E // num_heads
    qkv = hidden_states @ params["w_attn"] + params["b_attn"]
    q, k, v = jnp.split(qkv, 3, axis=-1)
    sh = lambda t: t.reshape(B, S, num_heads, D).transpose(0, 2, 1, 3)
    q, k, v = sh(q), sh(k), sh(v)
    s = jnp.einsum("bhqd,bhkd->bhqk", q, k) / math.sqrt(D)
    mask = jnp.tril(jnp.ones((S, S), dtype=bool))
    s = jnp.where(mask, s, -jnp.inf)
    p = jax.nn.softmax(s, axis=-1)
    o = jnp.einsum("bhqk,bhkd->bhqd", p, v)
    o = o.transpose(0, 2, 1, 3).reshape(B, S, E)
    return o @ params["w_proj"] + params["b_proj"]


if __name__ == "__main__":
    # Small config consistent with the module: hidden=32, heads=4 -> head_dim=8.
    B, S, E, H = 2, 8, 32, 4

    key = jax.random.PRNGKey(0)
    k_x, k_wa, k_ba, k_wp, k_bp = jax.random.split(key, 5)

    hidden_states = jax.random.normal(k_x, (B, S, E), dtype=jnp.float32)
    params = {
        # Conv1D weights stored (in_features, out_features), GPT2-style init.
        "w_attn": 0.02 * jax.random.normal(k_wa, (E, 3 * E), dtype=jnp.float32),
        "b_attn": 0.02 * jax.random.normal(k_ba, (3 * E,), dtype=jnp.float32),
        "w_proj": 0.02 * jax.random.normal(k_wp, (E, E), dtype=jnp.float32),
        "b_proj": 0.02 * jax.random.normal(k_bp, (E,), dtype=jnp.float32),
    }

    out = gpt2_flash_attention2_forward(hidden_states, params, H)
    out = jax.block_until_ready(out)

    ref = reference_forward(hidden_states, params, H)
    assert out.shape == (B, S, E)
    max_err = float(jnp.max(jnp.abs(out - ref)))
    # bf16 MXU inputs + approx reciprocal -> allow small numerical slack vs f32 ref.
    assert max_err < 3e-3, f"mismatch vs reference: max abs err {max_err}"

    # TODO(synk): variable-length unpad path (_upad_input / flash_attn_varlen_func),
    # layer_past KV cache, cross-attention and output_attentions are not implemented
    # since the forward is exercised with attention_mask=None in eval mode.
    print("KERNEL_OK")
</pallas_src>

<mosaic_0001>
module attributes {stable_mosaic.version = 11 : i64} {
  func.func @_proj_kernel(%arg0: i32, %arg1: i32, %arg2: i32, %arg3: memref<16x32xbf16, #tpu.memory_space<vmem>>, %arg4: memref<32x96xbf16, #tpu.memory_space<vmem>>, %arg5: memref<1x96xf32, #tpu.memory_space<vmem>>, %arg6: memref<16x96xbf16, #tpu.memory_space<vmem>>, %arg7: memref<16x96xf32, #tpu.memory_space<vmem>>) attributes {dimension_semantics = [#tpu.dimension_semantics<parallel>, #tpu.dimension_semantics<parallel>, #tpu.dimension_semantics<arbitrary>], iteration_bounds = array<i64: 1, 1, 1>, scalar_prefetch = 0 : i64, scratch_operands = 1 : i64, tpu.core_type = #tpu.core_type<tc>, window_params = [{transform_indices = @transform_0, window_bounds = array<i64: 16, 32>}, {transform_indices = @transform_1, window_bounds = array<i64: 32, 96>}, {transform_indices = @transform_2, window_bounds = array<i64: 1, 96>}, {transform_indices = @transform_3, window_bounds = array<i64: 16, 96>}]} {
    %c0_i32 = arith.constant 0 : i32
    %0 = arith.cmpi eq, %arg2, %c0_i32 : i32
    %1 = arith.extui %0 : i1 to i32
    %c0_i32_0 = arith.constant 0 : i32
    %2 = arith.cmpi ne, %1, %c0_i32_0 : i32
    scf.if %2 {
      %cst_10 = arith.constant 0.000000e+00 : f32
      %12 = vector.broadcast %cst_10 : f32 to vector<16x96xf32>
      %c0_11 = arith.constant 0 : index
      %c0_12 = arith.constant 0 : index
      %13 = vector.load %arg7[%c0_11, %c0_12] : memref<16x96xf32, #tpu.memory_space<vmem>>, vector<16x96xf32>
      tpu.vector_store %arg7[%c0_11, %c0_12], %12 {strides = array<i32>} : memref<16x96xf32, #tpu.memory_space<vmem>>, vector<16x96xf32>,
    } else {
    }
    %c0 = arith.constant 0 : index
    %c0_1 = arith.constant 0 : index
    %3 = vector.load %arg7[%c0, %c0_1] : memref<16x96xf32, #tpu.memory_space<vmem>>, vector<16x96xf32>
    %c0_2 = arith.constant 0 : index
    %c0_3 = arith.constant 0 : index
    %4 = vector.load %arg3[%c0_2, %c0_3] : memref<16x32xbf16, #tpu.memory_space<vmem>>, vector<16x32xbf16>
    %c0_4 = arith.constant 0 : index
    %c0_5 = arith.constant 0 : index
    %5 = vector.load %arg4[%c0_4, %c0_5] : memref<32x96xbf16, #tpu.memory_space<vmem>>, vector<32x96xbf16>
    %cst = arith.constant dense<0.000000e+00> : vector<16x96xf32>
    %6 = tpu.matmul %4, %5, %cst {dimension_numbers = #tpu.dot_dimension_numbers<[1], [0], [0], [1], [0, 0, 1, 1], [], []>} : vector<16x32xbf16>, vector<32x96xbf16>, vector<16x96xf32> -> vector<16x96xf32>
    %7 = arith.addf %3, %6 : vector<16x96xf32>
    %c0_6 = arith.constant 0 : index
    %c0_7 = arith.constant 0 : index
    %8 = vector.load %arg7[%c0_6, %c0_7] : memref<16x96xf32, #tpu.memory_space<vmem>>, vector<16x96xf32>
    tpu.vector_store %arg7[%c0_6, %c0_7], %7 {strides = array<i32>} : memref<16x96xf32, #tpu.memory_space<vmem>>, vector<16x96xf32>,
    %c0_i32_8 = arith.constant 0 : i32
    %9 = arith.cmpi eq, %arg2, %c0_i32_8 : i32
    %10 = arith.extui %9 : i1 to i32
    %c0_i32_9 = arith.constant 0 : i32
    %11 = arith.cmpi ne, %10, %c0_i32_9 : i32
    scf.if %11 {
      %c0_10 = arith.constant 0 : index
      %c0_11 = arith.constant 0 : index
      %12 = vector.load %arg7[%c0_10, %c0_11] : memref<16x96xf32, #tpu.memory_space<vmem>>, vector<16x96xf32>
      %c0_12 = arith.constant 0 : index
      %c0_13 = arith.constant 0 : index
      %13 = vector.load %arg5[%c0_12, %c0_13] : memref<1x96xf32, #tpu.memory_space<vmem>>, vector<1x96xf32>
      %14 = vector.broadcast %13 : vector<1x96xf32> to vector<16x96xf32>
      %15 = arith.addf %12, %14 : vector<16x96xf32>
      %16 = arith.truncf %15 : vector<16x96xf32> to vector<16x96xbf16>
      %c0_14 = arith.constant 0 : index
      %c0_15 = arith.constant 0 : index
      %17 = vector.load %arg6[%c0_14, %c0_15] : memref<16x96xbf16, #tpu.memory_space<vmem>>, vector<16x96xbf16>
      tpu.vector_store %arg6[%c0_14, %c0_15], %16 {strides = array<i32>} : memref<16x96xbf16, #tpu.memory_space<vmem>>, vector<16x96xbf16>,
    } else {
    }
    return
  }
  func.func @transform_0(%arg0: i32, %arg1: i32, %arg2: i32) -> (i32, i32) {
    %c0_i32 = arith.constant 0 : i32
    return %arg0, %arg2 : i32, i32
  }
  func.func @transform_1(%arg0: i32, %arg1: i32, %arg2: i32) -> (i32, i32) {
    %c0_i32 = arith.constant 0 : i32
    return %arg2, %arg1 : i32, i32
  }
  func.func @transform_2(%arg0: i32, %arg1: i32, %arg2: i32) -> (i32, i32) {
    %c0_i32 = arith.constant 0 : i32
    %c0_i32_0 = arith.constant 0 : i32
    return %c0_i32, %arg1 : i32, i32
  }
  func.func @transform_3(%arg0: i32, %arg1: i32, %arg2: i32) -> (i32, i32) {
    %c0_i32 = arith.constant 0 : i32
    return %arg0, %arg1 : i32, i32
  }
}

</mosaic_0001>

<bundles_post_ra>
// kernel: tpu_custom_call.1
= control target key start
LH: loop header
LB: loop body
LE: loop exit
PB: predicated region body
PF: predicated region fallthrough
CT: control target
= control target key end

     0   :  { %8 = vsyncpa [#allocation4], 0  ;;  %s317_s0 = inlined_call_operand.hbm [shape: bf16[16,32], index: 0, kind: input, shape index: {}]   ;;  %s318_s1 = inlined_call_operand.hbm [shape: bf16[32,96], index: 1, kind: input, shape index: {}]   ;;  %s319_s2 = inlined_call_operand.vmem [shape: f32[1,96], index: 2, kind: input, shape index: {}]   ;;  %s320_s3 = inlined_call_operand.hbm [shape: bf16[16,96], index: 3, kind: output, shape index: {}]  }
   0x1   :  { %9 = vsyncpa [#allocation7], 0 }
   0x2   :  { %10 = vsyncpa [#allocation5], 0  ;;  %s265_s12 = smov [#allocation3]  }
   0x3   :  { %s16_s13 = sshll.u32 %s265_s12, 4  ;;  %s17_s13 = int_to_ptr.vmem [resolvable:$true] %s16_s13 }
   0x4   :  { %s207_s14 = scalar_lea.vmem %s17_s13, 128  ;;  %p212_p1 = scmp.lt.s32.totalorder %s17_s13, %s17_s13 }
   0x5   :  { %p208_p0 = scmp.ne.s32.totalorder %s17_s13, %s207_s14  ;;  %p213_p2 = scmp.lt.s32.totalorder %s207_s14, %s207_s14 }
   0x7   :  { %p214_p3 = por %p213_p2, %p212_p1 }
   0x9   :  { %p215_p4 = pnand %p214_p3, %p208_p0 }
   0xb   :  { %218 = shalt.err (!%p215_p4)
}
   0xc   :  { %s266_s15 = smov 64   ;;  %s267_s16 = smov 4  }
   0xd   :  { %22 = dma.hbm_to_vmem [thread:$0]  %s317_s0, 128, %s17_s13, [#allocation4], %s266_s15, %s266_s15, %s267_s16  }
   0xe   :  { %s268_s19 = smov [#allocation6]  }
   0xf   :  { %s28_s20 = sshll.u32 %s268_s19, 4  ;;  %s29_s20 = int_to_ptr.vmem [resolvable:$true] %s28_s20 }
  0x10   :  { %s227_s21 = scalar_lea.vmem %s29_s20, 256  ;;  %p232_p6 = scmp.lt.s32.totalorder %s29_s20, %s29_s20 }
  0x11   :  { %p228_p5 = scmp.ne.s32.totalorder %s29_s20, %s227_s21  ;;  %p233_p7 = scmp.lt.s32.totalorder %s227_s21, %s227_s21 }
  0x13   :  { %p234_p8 = por %p233_p7, %p232_p6 }
  0x15   :  { %p235_p9 = pnand %p234_p8, %p228_p5 }
  0x17   :  { %238 = shalt.err (!%p235_p9)
}
  0x18   :  { %34 = dma.hbm_to_vmem [thread:$0]  %s318_s1, 256, %s29_s20, [#allocation7], %s266_s15, %s266_s15, %s267_s16  }
  0x19   :  { %259 = dma.done.wait [#allocation4], 128  }
  0x1a   :  { %260 = vsyncadd [#allocation4], 4294967168 }
  0x1b   :  { %261 = dma.done.wait [#allocation7], 256  }
  0x1c   :  { %262 = vsyncadd [#allocation7], 4294967040  ;;  %vm48_vm0 = vcmask 785408   ;;  %v269_v0 = vmov 0.0   ;;  %vm270_vm1 = vmmov 0   ;;  %v196_v1 = vld [vmem:[#allocation6 + $0x8] sm:$0xff]  }
  0x1d   :  { %49 = vst.msk [vmem:[#allocation2] sm:$0xff] %vm48_vm0, %v269_v0  ;;  %50 = vst.msk [vmem:[#allocation2 + $0x8] sm:$0xff] %vm48_vm0, %v269_v0  ;;  %181 = vmatprep.subr.bf16.mxu0 %v269_v0  ;;  %185 = vmatprep.mubr.msk.bf16.mxu0 %vm270_vm1, %v269_v0  ;;  %v197_v2 = vld [vmem:[#allocation6] sm:$0xff]   ;;  %v198_v3 = vld [vmem:[#allocation3] sm:$0xff]   ;;  %vm76_vm2 = vcmask 261120   ;;  %vm148_vm3 = vcmask 781312  }
  0x1e   :  { %182 = vmatpush3.bf16.msra.mxu0 %v196_v1  ;;  %v173_v12 = vld [vmem:[%s319_s2] ss:$0 sm:$0xff]  ;;  %s271_s24 = smov [#allocation8]  }
  0x1f   :  { %183 = vmatprep.subr.bf16.mxu0 %v269_v0  ;;  %s156_s25 = sshll.u32 %s271_s24, 4  ;;  %s157_s25 = int_to_ptr.vmem [resolvable:$true] %s156_s25 }
  0x20   :  { %s239_s26 = scalar_lea.vmem %s157_s25, 128  ;;  %p244_p11 = scmp.lt.s32.totalorder %s157_s25, %s157_s25 }
  0x21   :  { %p240_p10 = scmp.ne.s32.totalorder %s157_s25, %s239_s26  ;;  %p245_p12 = scmp.lt.s32.totalorder %s239_s26, %s239_s26 }
  0x22   :  { %184 = vmatpush3.bf16.msra.mxu0 %v197_v2 }
  0x23   :  { %p246_p13 = por %p245_p12, %p244_p11 }
  0x24   :  { %v51_v4 = vld [vmem:[#allocation2] sm:$0xff]  ;;  %v52_v8 = vld [vmem:[#allocation2 + $0x8] sm:$0xff] }
  0x25   :  { %186 = vmatmul.mubr.msk.bf16.vlgmr.msra.gmra.mxu0 %vm76_vm2, %v198_v3  ;;  %p247_p0 = pnand %p246_p13, %p240_p10 }
  0xe5   :  { %v114_v5 = vpop.f32.mrf.mxu0 }
  0xe6   :  { %v121_v6 = vadd.f32 %v114_v5, %v51_v4 }
  0xe7   :  { %v187_v7 = vpop.f32.mrf.mxu0 }
  0xe8   :  { %124 = vst.msk [vmem:[#allocation2] sm:$0xff] %vm48_vm0, %v121_v6 }
  0xe9   :  { %v117_v9 = vpop.f32.mrf.mxu0 }
  0xea   :  { %v122_v10 = vadd.f32 %v117_v9, %v52_v8 }
  0xeb   :  { %v188_v11 = vpop.f32.mrf.mxu0 }
  0xec   :  { %125 = vst.msk [vmem:[#allocation2 + $0x8] sm:$0xff] %vm48_vm0, %v122_v10 }
  0xef   :  { %v129_v13 = vld [vmem:[#allocation2] sm:$0xff] }
  0xf0   :  { %v138_v14 = vadd.f32 %v173_v12, %v129_v13 }
  0xf2   :  { %v176_v15 = vpack.c.bf16 %v138_v14, %v138_v14 }
  0xf3   :  { %v130_v16 = vld [vmem:[#allocation2 + $0x8] sm:$0xff] }
  0xf4   :  { %v139_v17 = vadd.f32 %v173_v12, %v130_v16  ;;  %149 = vst.msk [vmem:[#allocation8] sm:$0xf] %vm148_vm3, %v176_v15 }
  0xf6   :  { %v177_v18 = vpack.c.bf16 %v139_v17, %v139_v17 }
  0xf8   :  { %150 = vst.msk [vmem:[#allocation8 + $0x4] sm:$0xf] %vm148_vm3, %v177_v18 }
  0xf9   :  { %250 = shalt.err (!%p247_p0)
}
  0xfa   :  { %162 = dma.vmem_to_hbm [thread:$0]  %s157_s25, 128, %s320_s3, [#allocation5], %s266_s15, %s266_s15, %s267_s16  }
  0xfb   :  { %263 = dma.done.wait [#allocation5], 128  }
  0xfc   :  { %264 = vsyncadd [#allocation5], 4294967168 }
  0xfd   :  { %166 = vsyncpa [#allocation4], 1 }
  0xfe   :  { %167 = vsyncpa [#allocation7], 1 }
  0xff   :  { %168 = vsyncpa [#allocation5], 1 }

</bundles_post_ra>
